<compile_context>
chip_gen: v5e
topology: v5e:2x2
jax: 0.10.0
libtpu: 0.0.40
codegen_flags: <defaults>
</compile_context>

<pallas_src>
import functools

import jax
import jax.numpy as jnp
from jax import lax
from jax.experimental import pallas as pl
from jax.experimental.pallas import tpu as pltpu


def _supcr_kernel(e_tile_ref, e_full_ref, sq_row_ref, t_col_ref, t_row_ref,
                  out_ref, *, temp, tile_rows):
    ti = tile_rows
    tile_idx = pl.program_id(0)

    e_t = e_tile_ref[...].astype(jnp.float32)       # [TI, D] anchor rows
    e_f = e_full_ref[...].astype(jnp.float32)       # [M, D]  all rows
    sq_row = sq_row_ref[...].astype(jnp.float32)    # [1, M]  ||e_j||^2
    t_c = t_col_ref[...].astype(jnp.float32)        # [TI, 1] anchor targets
    t_r = t_row_ref[...].astype(jnp.float32)        # [1, M]  all targets
    m = e_f.shape[0]

    # --- pairwise distances for this anchor tile via the MXU ----------------
    g = lax.dot_general(e_t, e_f, (((1,), (1,)), ((), ())),
                        preferred_element_type=jnp.float32)     # [TI, M]
    sq_t = jnp.sum(e_t * e_t, axis=-1, keepdims=True)            # [TI, 1]
    d2 = jnp.maximum(sq_t + sq_row - 2.0 * g, 0.0)               # clamp fp noise
    dist = jnp.sqrt(d2)
    logsim = -dist / temp                                        # [TI, M]

    # --- index masks ---------------------------------------------------------
    col = lax.broadcasted_iota(jnp.int32, (ti, m), 1)            # global j
    row_g = lax.broadcasted_iota(jnp.int32, (ti, m), 0) + tile_idx * ti
    offdiag = col != row_g                                       # j != i
    row_gid = lax.broadcasted_iota(jnp.int32, (ti, 1), 0) + tile_idx * ti

    # exp-similarity weights with the diagonal removed (denominator j != i).
    w = jnp.where(offdiag, jnp.exp(logsim), 0.0)                 # [TI, M]

    # label distances |y_i - y_j| for this anchor tile (pure broadcast).
    adist = jnp.abs(t_c - t_r)                                   # [TI, M]

    # --- loop over the "positive" index k: only [TI, M] tensors live ---------
    def body(k, acc):
        sel = col == k                                           # one-hot lane
        a_k = jnp.sum(jnp.where(sel, adist, 0.0), axis=-1, keepdims=True)
        ls_k = jnp.sum(jnp.where(sel, logsim, 0.0), axis=-1, keepdims=True)
        thresh = (adist >= a_k).astype(jnp.float32)              # [TI, M]
        denom_k = jnp.sum(thresh * w, axis=-1, keepdims=True)    # [TI, 1]
        contrib = ls_k - jnp.log(denom_k)                        # log(sim/denom)
        return acc + jnp.where(row_gid != k, contrib, 0.0)

    acc = lax.fori_loop(0, m, body, jnp.zeros((ti, 1), jnp.float32))
    out_ref[...] = acc


def _pick_tile(m):
    for ti in (256, 128, 64, 32, 16, 8):
        if m % ti == 0:
            return ti
    return m


def supcr_loss(embeddings, targets, temp):
    m, d = embeddings.shape
    ti = _pick_tile(m)
    num_tiles = m // ti

    e = embeddings.astype(jnp.float32)
    sq_row = jnp.sum(e * e, axis=-1).reshape(1, m)
    t_col = targets.reshape(m, 1).astype(jnp.float32)
    t_row = targets.reshape(1, m).astype(jnp.float32)

    kernel = functools.partial(_supcr_kernel, temp=float(temp), tile_rows=ti)

    # rough per-tile VMEM estimate (double-buffered inputs + working set)
    est_bytes = 4 * (2 * (ti * d + m * d + 2 * m + 2 * ti) + 12 * ti * m)
    vmem_limit = int(min(max(4 * est_bytes, 8 * 1024 * 1024), 48 * 1024 * 1024))

    row_sums = pl.pallas_call(
        kernel,
        grid=(num_tiles,),
        in_specs=[
            pl.BlockSpec((ti, d), lambda i: (i, 0)),   # anchor rows tile
            pl.BlockSpec((m, d), lambda i: (0, 0)),    # all rows (resident)
            pl.BlockSpec((1, m), lambda i: (0, 0)),    # squared norms, lane-dense
            pl.BlockSpec((ti, 1), lambda i: (i, 0)),   # anchor targets (column)
            pl.BlockSpec((1, m), lambda i: (0, 0)),    # all targets, lane-dense
        ],
        out_specs=pl.BlockSpec((ti, 1), lambda i: (i, 0)),
        out_shape=jax.ShapeDtypeStruct((m, 1), jnp.float32),
        compiler_params=pltpu.CompilerParams(
            dimension_semantics=("parallel",),
            vmem_limit_bytes=vmem_limit,
        ),
    )(e, e, sq_row, t_col, t_row)

    return -jnp.sum(row_sums) / (m * (m - 1))


def supcr_reference(embeddings, targets, temp):
    """Pure-JAX transcription of the PyTorch forward (for verification)."""
    m = embeddings.shape[0]
    sim_t = jnp.abs(targets - targets.T)                         # [M, M]
    identity = jnp.ones((m, m), jnp.float32) - jnp.eye(m, dtype=jnp.float32)
    identity3 = identity[:, None, :] * jnp.ones((m,), jnp.float32)[None, :, None]
    targ = (sim_t[:, None, :] >= sim_t[:, :, None]).astype(jnp.float32) * identity3
    diff = embeddings[None, :, :] - embeddings[:, None, :]
    sim = jnp.exp(-jnp.sqrt(jnp.sum(diff * diff, axis=-1)) / temp)
    denom = jnp.sum(targ * sim[:, None, :], axis=-1)
    loss = jnp.log(sim / denom)
    mask = jnp.ones((m, m), jnp.float32) - jnp.eye(m, dtype=jnp.float32)
    loss = jnp.sum(loss * mask)
    return -loss / (m * (m - 1))


if __name__ == "__main__":
    two_N, d_model = 8, 32
    temp = 2.0

    key = jax.random.PRNGKey(0)
    k_emb, k_targ = jax.random.split(key)
    embeddings = jax.random.normal(k_emb, (two_N, d_model), jnp.float32)
    targets = jax.random.uniform(k_targ, (two_N, 1), jnp.float32) * 10.0

    loss = supcr_loss(embeddings, targets, temp)
    jax.block_until_ready(loss)

    ref = supcr_reference(embeddings, targets, temp)
    assert jnp.isfinite(loss), "non-finite loss"
    assert abs(float(loss) - float(ref)) < 1e-4 + 1e-4 * abs(float(ref)), (
        float(loss), float(ref))
    print("KERNEL_OK")
</pallas_src>

<mosaic_0001>
module attributes {stable_mosaic.version = 11 : i64} {
  func.func @_supcr_kernel(%arg0: i32, %arg1: memref<8x32xf32, #tpu.memory_space<vmem>>, %arg2: memref<8x32xf32, #tpu.memory_space<vmem>>, %arg3: memref<1x8xf32, #tpu.memory_space<vmem>>, %arg4: memref<8x1xf32, #tpu.memory_space<vmem>>, %arg5: memref<1x8xf32, #tpu.memory_space<vmem>>, %arg6: memref<8x1xf32, #tpu.memory_space<vmem>>) attributes {dimension_semantics = [#tpu.dimension_semantics<parallel>], iteration_bounds = array<i64: 1>, scalar_prefetch = 0 : i64, scratch_operands = 0 : i64, tpu.core_type = #tpu.core_type<tc>, window_params = [{transform_indices = @transform_0, window_bounds = array<i64: 8, 32>}, {pipeline_mode = #tpu.pipeline_mode<synchronous>, transform_indices = @transform_1, window_bounds = array<i64: 8, 32>}, {pipeline_mode = #tpu.pipeline_mode<synchronous>, transform_indices = @transform_2, window_bounds = array<i64: 1, 8>}, {transform_indices = @transform_3, window_bounds = array<i64: 8, 1>}, {pipeline_mode = #tpu.pipeline_mode<synchronous>, transform_indices = @transform_4, window_bounds = array<i64: 1, 8>}, {transform_indices = @transform_5, window_bounds = array<i64: 8, 1>}]} {
    %c0 = arith.constant 0 : index
    %c0_0 = arith.constant 0 : index
    %0 = vector.load %arg1[%c0, %c0_0] : memref<8x32xf32, #tpu.memory_space<vmem>>, vector<8x32xf32>
    %c0_1 = arith.constant 0 : index
    %c0_2 = arith.constant 0 : index
    %1 = vector.load %arg2[%c0_1, %c0_2] : memref<8x32xf32, #tpu.memory_space<vmem>>, vector<8x32xf32>
    %c0_3 = arith.constant 0 : index
    %c0_4 = arith.constant 0 : index
    %2 = vector.load %arg3[%c0_3, %c0_4] : memref<1x8xf32, #tpu.memory_space<vmem>>, vector<1x8xf32>
    %c0_5 = arith.constant 0 : index
    %c0_6 = arith.constant 0 : index
    %3 = vector.load %arg4[%c0_5, %c0_6] : memref<8x1xf32, #tpu.memory_space<vmem>>, vector<8x1xf32>
    %c0_7 = arith.constant 0 : index
    %c0_8 = arith.constant 0 : index
    %4 = vector.load %arg5[%c0_7, %c0_8] : memref<1x8xf32, #tpu.memory_space<vmem>>, vector<1x8xf32>
    %cst = arith.constant dense<0.000000e+00> : vector<8x8xf32>
    %5 = tpu.matmul %0, %1, %cst {dimension_numbers = #tpu.dot_dimension_numbers<[1], [1], [0], [0], [0, 0, 1, 0], [], []>} : vector<8x32xf32>, vector<8x32xf32>, vector<8x8xf32> -> vector<8x8xf32>
    %6 = arith.mulf %0, %0 : vector<8x32xf32>
    %cst_9 = arith.constant dense<0.000000e+00> : vector<8xf32>
    %7 = vector.multi_reduction <add>, %6, %cst_9 [1] : vector<8x32xf32> to vector<8xf32>
    %8 = vector.shape_cast %7 : vector<8xf32> to vector<8x1xf32>
    %9 = vector.broadcast %8 : vector<8x1xf32> to vector<8x8xf32>
    %10 = vector.broadcast %2 : vector<1x8xf32> to vector<8x8xf32>
    %11 = arith.addf %9, %10 : vector<8x8xf32>
    %cst_10 = arith.constant 2.000000e+00 : f32
    %12 = vector.broadcast %cst_10 : f32 to vector<8x8xf32>
    %13 = arith.mulf %12, %5 : vector<8x8xf32>
    %14 = arith.subf %11, %13 : vector<8x8xf32>
    %cst_11 = arith.constant 0.000000e+00 : f32
    %15 = vector.broadcast %cst_11 : f32 to vector<8x8xf32>
    %16 = arith.maximumf %14, %15 : vector<8x8xf32>
    %17 = math.sqrt %16 : vector<8x8xf32>
    %cst_12 = arith.constant 0.000000e+00 : f32
    %18 = vector.broadcast %cst_12 : f32 to vector<8x8xf32>
    %19 = arith.subf %18, %17 : vector<8x8xf32>
    %cst_13 = arith.constant 2.000000e+00 : f32
    %20 = vector.broadcast %cst_13 : f32 to vector<8x8xf32>
    %21 = arith.divf %19, %20 : vector<8x8xf32>
    %22 = tpu.iota {dimensions = array<i32: 1>} : vector<8x8xi32>
    %23 = tpu.iota {dimensions = array<i32: 0>} : vector<8x8xi32>
    %c8_i32 = arith.constant 8 : i32
    %24 = arith.muli %arg0, %c8_i32 : i32
    %25 = vector.broadcast %24 : i32 to vector<8x8xi32>
    %26 = arith.addi %23, %25 : vector<8x8xi32>
    %27 = arith.cmpi ne, %22, %26 : vector<8x8xi32>
    %28 = tpu.iota {dimensions = array<i32: 0>} : vector<8x1xi32>
    %c8_i32_14 = arith.constant 8 : i32
    %29 = arith.muli %arg0, %c8_i32_14 : i32
    %30 = vector.broadcast %29 : i32 to vector<8x1xi32>
    %31 = arith.addi %28, %30 : vector<8x1xi32>
    %32 = math.exp %21 : vector<8x8xf32>
    %cst_15 = arith.constant 0.000000e+00 : f32
    %33 = vector.broadcast %cst_15 : f32 to vector<8x8xf32>
    %34 = arith.select %27, %32, %33 : vector<8x8xi1>, vector<8x8xf32>
    %35 = vector.broadcast %3 : vector<8x1xf32> to vector<8x8xf32>
    %36 = vector.broadcast %4 : vector<1x8xf32> to vector<8x8xf32>
    %37 = arith.subf %35, %36 : vector<8x8xf32>
    %38 = math.absf %37 : vector<8x8xf32>
    %cst_16 = arith.constant 0.000000e+00 : f32
    %39 = vector.broadcast %cst_16 : f32 to vector<8x1xf32>
    %c0_i32 = arith.constant 0 : i32
    %c8_i32_17 = arith.constant 8 : i32
    %40 = arith.addi %c0_i32, %c8_i32_17 : i32
    %c1_i32 = arith.constant 1 : i32
    %41 = scf.for %arg7 = %c0_i32 to %40 step %c1_i32 iter_args(%arg8 = %39) -> (vector<8x1xf32>)  : i32 {
      %43 = vector.broadcast %arg7 : i32 to vector<8x8xi32>
      %44 = arith.cmpi eq, %22, %43 : vector<8x8xi32>
      %cst_21 = arith.constant 0.000000e+00 : f32
      %45 = vector.broadcast %cst_21 : f32 to vector<8x8xf32>
      %46 = arith.select %44, %38, %45 : vector<8x8xi1>, vector<8x8xf32>
      %cst_22 = arith.constant dense<0.000000e+00> : vector<8xf32>
      %47 = vector.multi_reduction <add>, %46, %cst_22 [1] : vector<8x8xf32> to vector<8xf32>
      %48 = vector.shape_cast %47 : vector<8xf32> to vector<8x1xf32>
      %cst_23 = arith.constant 0.000000e+00 : f32
      %49 = vector.broadcast %cst_23 : f32 to vector<8x8xf32>
      %50 = arith.select %44, %21, %49 : vector<8x8xi1>, vector<8x8xf32>
      %cst_24 = arith.constant dense<0.000000e+00> : vector<8xf32>
      %51 = vector.multi_reduction <add>, %50, %cst_24 [1] : vector<8x8xf32> to vector<8xf32>
      %52 = vector.shape_cast %51 : vector<8xf32> to vector<8x1xf32>
      %53 = vector.broadcast %48 : vector<8x1xf32> to vector<8x8xf32>
      %54 = arith.cmpf oge, %38, %53 : vector<8x8xf32>
      %55 = arith.extui %54 : vector<8x8xi1> to vector<8x8xi32>
      %56 = arith.sitofp %55 : vector<8x8xi32> to vector<8x8xf32>
      %57 = arith.mulf %56, %34 : vector<8x8xf32>
      %cst_25 = arith.constant dense<0.000000e+00> : vector<8xf32>
      %58 = vector.multi_reduction <add>, %57, %cst_25 [1] : vector<8x8xf32> to vector<8xf32>
      %59 = vector.shape_cast %58 : vector<8xf32> to vector<8x1xf32>
      %60 = math.log %59 : vector<8x1xf32>
      %61 = arith.subf %52, %60 : vector<8x1xf32>
      %62 = vector.broadcast %arg7 : i32 to vector<8x1xi32>
      %63 = arith.cmpi ne, %31, %62 : vector<8x1xi32>
      %cst_26 = arith.constant 0.000000e+00 : f32
      %64 = vector.broadcast %cst_26 : f32 to vector<8x1xf32>
      %65 = arith.select %63, %61, %64 : vector<8x1xi1>, vector<8x1xf32>
      %66 = arith.addf %arg8, %65 : vector<8x1xf32>
      scf.yield %66 : vector<8x1xf32>
    }
    %c8_i32_18 = arith.constant 8 : i32
    %c0_19 = arith.constant 0 : index
    %c0_20 = arith.constant 0 : index
    %42 = vector.load %arg6[%c0_19, %c0_20] : memref<8x1xf32, #tpu.memory_space<vmem>>, vector<8x1xf32>
    tpu.vector_store %arg6[%c0_19, %c0_20], %41 {strides = array<i32>} : memref<8x1xf32, #tpu.memory_space<vmem>>, vector<8x1xf32>,
    return
  }
  func.func @transform_0(%arg0: i32) -> (i32, i32) {
    %c0_i32 = arith.constant 0 : i32
    %c0_i32_0 = arith.constant 0 : i32
    return %arg0, %c0_i32 : i32, i32
  }
  func.func @transform_1(%arg0: i32) -> (i32, i32) {
    %c0_i32 = arith.constant 0 : i32
    %c0_i32_0 = arith.constant 0 : i32
    %c0_i32_1 = arith.constant 0 : i32
    return %c0_i32, %c0_i32_0 : i32, i32
  }
  func.func @transform_2(%arg0: i32) -> (i32, i32) {
    %c0_i32 = arith.constant 0 : i32
    %c0_i32_0 = arith.constant 0 : i32
    %c0_i32_1 = arith.constant 0 : i32
    return %c0_i32, %c0_i32_0 : i32, i32
  }
  func.func @transform_3(%arg0: i32) -> (i32, i32) {
    %c0_i32 = arith.constant 0 : i32
    %c0_i32_0 = arith.constant 0 : i32
    return %arg0, %c0_i32 : i32, i32
  }
  func.func @transform_4(%arg0: i32) -> (i32, i32) {
    %c0_i32 = arith.constant 0 : i32
    %c0_i32_0 = arith.constant 0 : i32
    %c0_i32_1 = arith.constant 0 : i32
    return %c0_i32, %c0_i32_0 : i32, i32
  }
  func.func @transform_5(%arg0: i32) -> (i32, i32) {
    %c0_i32 = arith.constant 0 : i32
    %c0_i32_0 = arith.constant 0 : i32
    return %arg0, %c0_i32 : i32, i32
  }
}

</mosaic_0001>

<bundles_post_ra>
// kernel: tpu_custom_call.1
= control target key start
LH: loop header
LB: loop body
LE: loop exit
PB: predicated region body
PF: predicated region fallthrough
CT: control target
= control target key end

     0   :  { %10 = vsyncpa [#allocation3], 0  ;;  %s241_s21 = smov [#allocation2]   ;;  %s306_s0 = inlined_call_operand.vmem [shape: f32[8,32], index: 0, kind: input, shape index: {}]   ;;  %s307_s1 = inlined_call_operand.hbm [shape: f32[8,32], index: 1, kind: input, shape index: {}]   ;;  %s308_s2 = inlined_call_operand.vmem [shape: f32[1,8], index: 2, kind: input, shape index: {}]   ;;  %s309_s3 = inlined_call_operand.vmem [shape: f32[8,1], index: 3, kind: input, shape index: {}]   ;;  %s310_s4 = inlined_call_operand.vmem [shape: f32[1,8], index: 4, kind: input, shape index: {}]   ;;  %s311_s5 = inlined_call_operand.vmem [shape: f32[8,1], index: 5, kind: output, shape index: {}]  }
   0x1   :  { %s18_s20 = sshll.u32 %s307_s1, 4  ;;  %s20_s22 = sshll.u32 %s241_s21, 4  ;;  %s19_s20 = int_to_ptr.hbm [resolvable:$true] %s18_s20  ;;  %s21_s22 = int_to_ptr.vmem [resolvable:$true] %s20_s22 }
   0x2   :  { %23 = dma.hbm_to_vmem [thread:$0]  %s19_s20, 128, %s21_s22, [#allocation3]  }
   0x3   :  { %231 = dma.done.wait [#allocation3], 128  }
   0x4   :  { %232 = vsyncadd [#allocation3], 4294967168  ;;  %v242_v0 = vmov 0   ;;  %vm39_vm0 = vcmask 261120   ;;  %v35_v1 = vld [vmem:[#allocation2] sm:$0xff]  ;;  %v243_v11 = vmov 2.0   ;;  %v98_v36 = vlaneseq }
   0x5   :  { %188 = vset.pattern.permute.xlu0 %v242_v0  ;;  %v34_v2 = vld [vmem:[%s306_s0] sm:$0xff]  ;;  %165 = vmatpush.xpose.msk.msra.mxu0 %vm39_vm0, %v35_v1  ;;  %191 = vrcp.f32 %v243_v11  ;;  %v233_v42 = vmov 0.0  }
   0x6   :  { %v66_v3 = vmul.f32 %v34_v2, %v34_v2  ;;  %v37_v5 = vld [vmem:[%s309_s3] sm:$0xff]  ;;  %v99_v38 = vand.u32 127, %v98_v36  ;;  %v101_v39 = vshrl.u32 %v98_v36, 7 }
   0x7   :  { %v189_v6 = vld [vmem:[%s308_s2] ss:$0 sm:$0xff]  ;;  %s292_s2 = smov 0  }
   0x8   :  { %v67_v4 = vsel %vm39_vm0, %v66_v3, 0.0  ;;  %166 = vmatmul.msk.f32.vlgmr.msra.gmra.mxu0 %vm39_vm0, %v34_v2  ;;  %v190_v14 = vld [vmem:[%s310_s4] ss:$0 sm:$0xff]  ;;  %vm105_vm4 = vcmp.ne.s32.totalorder %v99_v38, %v101_v39 }
   0x9   :  { %68 = vadd.xlane.f32.xlu0 %v67_v4 }
   0xb   :  { %v192_v15 = vpop.eup %191 }
   0xc   :  { %v91_v18 = vmul.f32 2.0, %v192_v15  ;;  %vm95_vm1 = vweird.f32 %v192_v15 }
   0xe   :  { %v92_v22 = vsub.f32 1.0, %v91_v18 }
  0x10   :  { %v93_v25 = vmul.f32 %v192_v15, %v92_v22 }
  0x12   :  { %v94_v28 = vadd.f32 %v192_v15, %v93_v25 }
  0x14   :  { %v96_v33 = vsel %vm95_vm1, %v192_v15, %v94_v28 }
  0x1d   :  { %111 = vperm.xlu0 %188, %v37_v5  }
  0x7c   :  { %v69_v7 = vpop.xlane.xlu0 %68 }
  0x7d   :  { %v73_v8 = vadd.f32 %v189_v6, %v69_v7 }
  0x85   :  { %v63_v9 = vpop.f32.mrf.mxu0 }
  0x86   :  { %v74_v10 = vmul.f32 2.0, %v63_v9 }
  0x88   :  { %v75_v12 = vsub.f32 %v73_v8, %v74_v10 }
  0x8a   :  { %v76_v13 = vmax.f32 %v75_v12, 0.0 }
  0x8c   :  { %193 = vrsqrt.f32 %v76_v13  ;;  %vm84_vm2 = vcmp.eq.f32.partialorder %v76_v13, inf  ;;  %v87_v30 = vand.u32 2147483648, %v76_v13  ;;  %vm86_vm3 = vcmp.eq.f32.partialorder %v76_v13, 0.0 }
  0x8f   :  { %v112_v16 = vpop.permute.xlu0 %111 }
  0x90   :  { %v117_v17 = vsub.f32 %v112_v16, %v190_v14 }
  0x92   :  { %v290_v19 = vand.u32 2147483647, %v117_v17  ;;  %v194_v20 = vpop.eup %193 }
  0x93   :  { %v78_v21 = vmul.f32 %v194_v20, %v76_v13 }
  0x95   :  { %v79_v23 = vmul.f32 %v194_v20, %v78_v21 }
  0x97   :  { %v80_v24 = vmul.f32 0.5, %v79_v23 }
  0x99   :  { %v81_v26 = vsub.f32 1.5, %v80_v24 }
  0x9b   :  { %v82_v27 = vmul.f32 %v194_v20, %v81_v26 }
  0x9d   :  { %v83_v29 = vmul.f32 %v82_v27, %v76_v13 }
  0x9f   :  { %v85_v31 = vsel %vm84_vm2, %v76_v13, %v83_v29 }
  0xa0   :  { %v88_v32 = vsel %vm86_vm3, %v87_v30, %v85_v31 }
  0xa1   :  { %v89_v34 = vsub.f32 0.0, %v88_v32 }
  0xa3   :  { %v97_v35 = vmul.f32 %v96_v33, %v89_v34 }
  0xa5   :  { %v106_v37 = vmul.f32 1.442695, %v97_v35 }
  0xa7   :  { %195 = vpow2.f32 %v106_v37 }
  0xad   :  { %v196_v40 = vpop.eup %195 }
  0xae   :  { %v108_v41 = vsel %vm105_vm4, %v196_v40, 0.0 }
  0xaf LB: > { %v126_v43 = vstv %s239_s2  ;;  %vm129_vm5 = vcmask 64512   ;;  %v244_v49 = vmov 0.0   ;;  %s124_s2 = sadd.s32 1, %s239_s2   ;;  %s239_s2 = sphi %s292_s2, %s124_s2   ;;  %v235_v42 = vphi %v233_v42, %v234_v42  }
  0xb0   : > { %vm127_vm6 = vcmp.eq.s32.totalorder %v99_v38, %v126_v43  ;;  %vm147_vm8 = vcmp.ne.s32.totalorder %v101_v39, %v126_v43  ;;  %p121_p0 = scmp.ge.s32.totalorder %s124_s2, 8  }
  0xb1   : > { %v128_v44 = vsel %vm127_vm6, %v290_v19, 0.0  ;;  %v133_v46 = vsel %vm127_vm6, %v97_v35, 0.0  ;;  %vm150_vm9 = vcmask (%p121_p0), 7168  }
  0xb2   : > { %v130_v45 = vsel %vm129_vm5, %v128_v44, 0.0  ;;  %v134_v47 = vsel %vm129_vm5, %v133_v46, 0.0 }
  0xb3   : > { %131 = vadd.xlane.f32.xlu0 %v130_v45  ;;  %135 = vadd.xlane.f32.xlu1 %v134_v47 }
 0x126   : > { %v132_v48 = vpop.xlane.xlu0 %131  ;;  %v136_v55 = vpop.xlane.xlu1 %135 }
 0x127   : > { %vm137_vm7 = vcmp.ge.f32.partialorder %v290_v19, %v132_v48 }
 0x128   : > { %v167_v50 = vsel %vm137_vm7, 1.0, %v244_v49 }
 0x129   : > { %v140_v51 = vmul.f32 %v167_v50, %v108_v41 }
 0x12b   : > { %v141_v52 = vsel %vm129_vm5, %v140_v51, 0.0 }
 0x12c   : > { %142 = vadd.xlane.f32.xlu0 %v141_v52 }
 0x19f   : > { %v143_v53 = vpop.xlane.xlu0 %142 }
 0x1a0   : > { %197 = vlog2.f32 %v143_v53 }
 0x1a6   : > { %v198_v54 = vpop.eup %197 }
 0x1a7   : > { %v145_v56 = vmul.f32 0.6931472, %v198_v54 }
 0x1a9   : > { %v146_v57 = vsub.f32 %v136_v55, %v145_v56 }
 0x1aa   :  { %123 = sbr.rel (!%p121_p0) target bundleno = 175 (0xaf), region = 51 }
 0x1ab   : > { %v148_v58 = vsel %vm147_vm8, %v146_v57, 0.0 }
 0x1ac   : > { %v149_v59 = vadd.f32 %v235_v42, %v148_v58  }
 0x1ae   : > { %v234_v42 = vmov %v149_v59   ;;  %151 = vst.msk [vmem:[%s311_s5] sm:$0xff] (%p121_p0), %vm150_vm9, %v149_v59 }
 0x1af   :  { %156 = vsyncpa [#allocation3], 1 }

</bundles_post_ra>
